<compile_context>
chip_gen: v5e
topology: v5e:2x2
jax: 0.10.0
libtpu: 0.0.40
codegen_flags: <defaults>
</compile_context>

<pallas_src>
import jax
import jax.numpy as jnp
from jax.experimental import pallas as pl
from jax.experimental.pallas import tpu as pltpu


def _fc_matmul_kernel_single_pass(x_ref, p_ref, o_ref):
    # x_ref: (tm, K), p_ref: (K, tn), o_ref: (tm, tn).
    # Full reduction in one MXU call; store directly (lane-dense unmasked vst).
    o_ref[...] = jnp.dot(
        x_ref[...], p_ref[...], preferred_element_type=jnp.float32
    ).astype(o_ref.dtype)


def _fc_matmul_kernel_acc(x_ref, p_ref, o_ref, acc_ref):
    # x_ref: (tm, tk), p_ref: (tk, tn), o_ref: (tm, tn), acc_ref: (tm, tn) f32.
    @pl.when(pl.program_id(2) == 0)
    def _():
        acc_ref[...] = jnp.zeros_like(acc_ref)

    acc_ref[...] += jnp.dot(
        x_ref[...], p_ref[...], preferred_element_type=jnp.float32
    )

    @pl.when(pl.program_id(2) == pl.num_programs(2) - 1)
    def _():
        o_ref[...] = acc_ref[...].astype(o_ref.dtype)


def _pick_tile(dim, target, align):
    """Full-extent block when small; otherwise an `align`-aligned tile."""
    if dim <= target:
        return dim
    return max((target // align) * align, align)


def fc_zero_init_forward(x: jax.Array, param: jax.Array, input_shape) -> jax.Array:
    """FCZeroInit.forward: (x @ param) reshaped to (B, shape[1], shape[2], shape[3])."""
    M, K = x.shape
    Kp, N = param.shape
    assert K == Kp, f"inner dims mismatch: {K} vs {Kp}"

    tm = _pick_tile(M, 512, 8)      # sublane axis: multiple of 8 or full dim
    tn = _pick_tile(N, 512, 128)    # lane axis: multiple of 128 or full dim
    # Reduction axis: only tile when it divides cleanly, else take it whole
    # (a padded partial K block would pollute the accumulator).
    tk = 512 if (K > 512 and K % 512 == 0) else K

    if tk == K:
        # Single-pass reduction: 2D grid, no accumulator scratch needed.
        grid = (pl.cdiv(M, tm), pl.cdiv(N, tn))
        out2d = pl.pallas_call(
            _fc_matmul_kernel_single_pass,
            out_shape=jax.ShapeDtypeStruct((M, N), x.dtype),
            grid_spec=pltpu.PrefetchScalarGridSpec(
                num_scalar_prefetch=0,
                grid=grid,
                in_specs=[
                    pl.BlockSpec((tm, K), lambda i, j: (i, 0)),
                    pl.BlockSpec((K, tn), lambda i, j: (0, j)),
                ],
                out_specs=pl.BlockSpec((tm, tn), lambda i, j: (i, j)),
            ),
            compiler_params=pltpu.CompilerParams(
                dimension_semantics=("parallel", "parallel"),
            ),
        )(x, param)
    else:
        # General case: reduction axis last, f32 accumulator resident across K.
        grid = (pl.cdiv(M, tm), pl.cdiv(N, tn), pl.cdiv(K, tk))
        out2d = pl.pallas_call(
            _fc_matmul_kernel_acc,
            out_shape=jax.ShapeDtypeStruct((M, N), x.dtype),
            grid_spec=pltpu.PrefetchScalarGridSpec(
                num_scalar_prefetch=0,
                grid=grid,
                in_specs=[
                    pl.BlockSpec((tm, tk), lambda i, j, k: (i, k)),
                    pl.BlockSpec((tk, tn), lambda i, j, k: (k, j)),
                ],
                out_specs=pl.BlockSpec((tm, tn), lambda i, j, k: (i, j)),
                scratch_shapes=[pltpu.VMEM((tm, tn), jnp.float32)],
            ),
            compiler_params=pltpu.CompilerParams(
                dimension_semantics=("parallel", "parallel", "arbitrary"),
            ),
        )(x, param)

    # The .view(...) of the PyTorch forward: pure metadata reshape in the wrapper.
    return out2d.reshape((M,) + tuple(input_shape[1:]))


if __name__ == "__main__":
    key = jax.random.PRNGKey(0)
    k_x, k_p = jax.random.split(key)

    # Module construction mirrors FCZeroInit.__init__ with
    # input_shape = (K, C, H, W) -> param shape (K, C*H*W).
    input_shape = (8, 4, 16, 16)
    K = input_shape[0]
    N = input_shape[1] * input_shape[2] * input_shape[3]   # 1024
    batch = 2

    x = jax.random.normal(k_x, (batch, K), dtype=jnp.float32)

    # 1) Faithful to __init__: zero-initialized parameter -> output must be zeros.
    param_zero = jnp.zeros((K, N), dtype=jnp.float32)
    out_zero = fc_zero_init_forward(x, param_zero, input_shape)
    jax.block_until_ready(out_zero)
    assert out_zero.shape == (batch,) + tuple(input_shape[1:])
    assert out_zero.dtype == x.dtype
    assert jnp.allclose(out_zero, 0.0)

    # 2) Non-trivial (as-if-trained) weights: check against plain-JAX reference.
    param = 0.01 * jax.random.normal(k_p, (K, N), dtype=jnp.float32)
    out = fc_zero_init_forward(x, param, input_shape)
    jax.block_until_ready(out)

    ref = jnp.matmul(x, param).reshape((batch,) + tuple(input_shape[1:]))
    assert out.shape == ref.shape and out.dtype == x.dtype
    assert jnp.allclose(out, ref, atol=1e-5, rtol=1e-5)

    # 3) Exercise the accumulator (tiled-K) path with a larger K that divides 512.
    K2, N2 = 1024, 640
    x2 = jax.random.normal(k_x, (16, K2), dtype=jnp.float32)
    p2 = 0.01 * jax.random.normal(k_p, (K2, N2), dtype=jnp.float32)
    out2 = fc_zero_init_forward(x2, p2, (K2, 1, 1, N2))
    jax.block_until_ready(out2)
    ref2 = jnp.matmul(x2, p2).reshape((16, 1, 1, N2))
    assert jnp.allclose(out2, ref2, atol=1e-4, rtol=1e-4)

    print("KERNEL_OK")
</pallas_src>

<mosaic_0001>
module attributes {stable_mosaic.version = 11 : i64} {
  func.func @_fc_matmul_kernel_single_pass(%arg0: i32, %arg1: i32, %arg2: memref<2x8xf32, #tpu.memory_space<vmem>>, %arg3: memref<8x512xf32, #tpu.memory_space<vmem>>, %arg4: memref<2x512xf32, #tpu.memory_space<vmem>>) attributes {dimension_semantics = [#tpu.dimension_semantics<parallel>, #tpu.dimension_semantics<parallel>], iteration_bounds = array<i64: 1, 2>, scalar_prefetch = 0 : i64, scratch_operands = 0 : i64, tpu.core_type = #tpu.core_type<tc>, window_params = [{transform_indices = @transform_0, window_bounds = array<i64: 2, 8>}, {transform_indices = @transform_1, window_bounds = array<i64: 8, 512>}, {transform_indices = @transform_2, window_bounds = array<i64: 2, 512>}]} {
    %c0 = arith.constant 0 : index
    %c0_0 = arith.constant 0 : index
    %0 = vector.load %arg2[%c0, %c0_0] : memref<2x8xf32, #tpu.memory_space<vmem>>, vector<2x8xf32>
    %c0_1 = arith.constant 0 : index
    %c0_2 = arith.constant 0 : index
    %1 = vector.load %arg3[%c0_1, %c0_2] : memref<8x512xf32, #tpu.memory_space<vmem>>, vector<8x512xf32>
    %cst = arith.constant dense<0.000000e+00> : vector<2x512xf32>
    %2 = tpu.matmul %0, %1, %cst {dimension_numbers = #tpu.dot_dimension_numbers<[1], [0], [0], [1], [0, 0, 1, 1], [], []>} : vector<2x8xf32>, vector<8x512xf32>, vector<2x512xf32> -> vector<2x512xf32>
    %c0_3 = arith.constant 0 : index
    %c0_4 = arith.constant 0 : index
    %3 = vector.load %arg4[%c0_3, %c0_4] : memref<2x512xf32, #tpu.memory_space<vmem>>, vector<2x512xf32>
    tpu.vector_store %arg4[%c0_3, %c0_4], %2 {strides = array<i32>} : memref<2x512xf32, #tpu.memory_space<vmem>>, vector<2x512xf32>,
    return
  }
  func.func @transform_0(%arg0: i32, %arg1: i32) -> (i32, i32) {
    %c0_i32 = arith.constant 0 : i32
    %c0_i32_0 = arith.constant 0 : i32
    return %arg0, %c0_i32 : i32, i32
  }
  func.func @transform_1(%arg0: i32, %arg1: i32) -> (i32, i32) {
    %c0_i32 = arith.constant 0 : i32
    %c0_i32_0 = arith.constant 0 : i32
    return %c0_i32, %arg1 : i32, i32
  }
  func.func @transform_2(%arg0: i32, %arg1: i32) -> (i32, i32) {
    %c0_i32 = arith.constant 0 : i32
    return %arg0, %arg1 : i32, i32
  }
}

</mosaic_0001>

<bundles_post_ra>
// kernel: tpu_custom_call.1
= control target key start
LH: loop header
LB: loop body
LE: loop exit
PB: predicated region body
PF: predicated region fallthrough
CT: control target
= control target key end

     0   :  { %7 = vsyncpa [#allocation3], 0  ;;  %s828_s0 = inlined_call_operand.hbm [shape: f32[2,8], index: 0, kind: input, shape index: {}]   ;;  %s829_s1 = inlined_call_operand.hbm [shape: f32[8,1024], index: 1, kind: input, shape index: {}]   ;;  %s830_s2 = inlined_call_operand.hbm [shape: f32[2,1024], index: 2, kind: output, shape index: {}]  }
   0x1   :  { %8 = vsyncpa [#allocation6], 0 }
   0x2   :  { %10 = vsyncpa [#allocation6 + $0x1], 0 }
   0x3   :  { %11 = vsyncpa [#allocation4], 0 }
   0x4   :  { %13 = vsyncpa [#allocation4 + $0x1], 0  ;;  %s678_s9 = smov 0   ;;  %s680_s10 = smov 0  }
   0x5   :  { %s682_s11 = smov 0   ;;  %s684_s12 = smov 0  }
   0x6   :  { %s686_s13 = smov 0   ;;  %s688_s14 = smov 0  }
   0x7 LB: > { %s418_s15 = sadd.s32 4294967295, %s660_s14   ;;  %s419_s16 = sadd.s32 4294967294, %s660_s14   ;;  %s660_s14 = sphi %s688_s14, %s19_s14   ;;  %s656_s13 = sphi %s686_s13, %s842_s13   ;;  %s652_s12 = sphi %s684_s12, %s841_s12   ;;  %s648_s11 = sphi %s682_s11, %s840_s11   ;;  %s644_s10 = sphi %s680_s10, %s839_s10   ;;  %s640_s9 = sphi %s678_s9, %s838_s9  }
   0x8   : > { %p77_p0 = scmp.ne.s32.totalorder %s644_s10, %s640_s9  ;;  %p712_p1 = scmp.eq.s32.totalorder %s418_s15, 0 }
   0x9   : > { %p716_p2 = scmp.eq.s32.totalorder %s418_s15, 1  ;;  %p109_p3 = scmp.eq.s32.totalorder %s419_s16, 1 }
   0xa   : > { %p722_p4 = por %p712_p1, %p77_p0  ;;  %p420_p5 = scmp.ge.s32.totalorder %s660_s14, 1 }
   0xb   : > { %p727_p6 = por %p109_p3, %p77_p0  ;;  %p116_p7 = scmp.lt.s32.totalorder %s660_s14, 3 }
   0xc   : > { %s130_s23 = sshll.u32 %s828_s0, 4  ;;  %p422_p9 = scmp.ge.s32.totalorder %s660_s14, 2  ;;  %s131_s23 = int_to_ptr.hbm [resolvable:$true] %s130_s23 }
   0xd   : > { %p735_p8 = pnand %p420_p5, %p116_p7  ;;  %s662_s25 = smov [#allocation2]  }
   0xe   : > { %s132_s26 = sshll.u32 %s662_s25, 4  ;;  %s28_s27 = sadd.s32 1, %s656_s13  ;;  %s133_s26 = int_to_ptr.vmem [resolvable:$true] %s132_s26 }
   0xf   : > { %p449_p10 = pneg %p735_p8  ;;  %p29_p12 = scmp.ge.s32.totalorder %s28_s27, 2 }
  0x10   : > { %s64_s28 = sadd.s32 1, %s648_s11  ;;  %p71_p13 = scmp.ne.s32.totalorder %s648_s11, %s644_s10 }
  0x11   : > { %p450_p11 = pnand %p449_p10, %p712_p1  ;;  %p72_p0 = scmp.eq.s32.totalorder %s660_s14, 0 }
  0x12   : > { %s844_s27 = smov (%p29_p12, %s28_s27), 0  ;;  %p757_p5 = por %p716_p2, %p71_p13 }
  0x13   : > { %452 = dma.hbm_to_vmem [thread:$0]  (!%p450_p11), %s131_s23, 32, %s133_s26, [#allocation3]  }
  0x14   : > { %p751_p3 = por %p72_p0, %p71_p13  ;;  %s61_s3 = ssub.s32 %s656_s13, %s844_s27 }
  0x15   : > { %p462_p7 = scmp.lt.s32.totalorder %s660_s14, 2  ;;  %p62_p10 = scmp.eq.s32.totalorder %s61_s3, 0 }
  0x16   : > { %s143_s4 = sand.u32 1, %s648_s11   ;;  %s439_s7 = sshll.u32 %s656_s13, 5 }
  0x17   : > { %s423_s5 = sshll.u32 %s143_s4, 5  ;;  %s152_s16 = scalar_lea.hbm %s829_s1, %s439_s7 }
  0x18   : > { %s766_s6 = scalar_select %p62_p10, %s648_s11, %s64_s28  }
  0x19   : > { %s147_s21 = scalar_lea.vmem [#allocation5], %s423_s5  ;;  %s154_s18 = sshll.u32 %s152_s16, 4  ;;  %s155_s18 = int_to_ptr.hbm [resolvable:$true] %s154_s18 }
  0x1a   : > { %s156_s22 = sshll.u32 %s147_s21, 4  ;;  %p454_p2 = pnand %p462_p7, %p751_p3  ;;  %s157_s22 = int_to_ptr.vmem [resolvable:$true] %s156_s22 }
  0x1b   : > { %s144_s23 = scalar_lea.sflag [#allocation6], %s143_s4  ;;  %165 = sbr.rel (%p735_p8) target bundleno = 178 (0xb2), region = 28 }
  0x1c   : > { %456 = dma.hbm_to_vmem [thread:$0]  (!%p454_p2), %s155_s18, 512, %s157_s22, %s144_s23  }
  0x20   : > { %627 = dma.done.wait (%p712_p1), [#allocation3], 32  }
  0x21   : > { %629 = vsyncadd (%p712_p1), [#allocation3], 4294967264  ;;  %s781_s25 = sand.u32 1, %s644_s10  }
  0x22   : > { %s428_s26 = sshll.u32 %s781_s25, 5  ;;  %s173_s28 = scalar_lea.sflag [#allocation6], %s781_s25 }
  0x23   : > { %s176_s29 = scalar_lea.vmem [#allocation5], %s428_s26 }
  0x24   : > { %631 = dma.done.wait (%p722_p4), %s173_s28, 512  }
  0x25   : > { %633 = vsyncadd (%p722_p4), %s173_s28, 4294966784  ;;  %vm205_vm0 = vcmask 64512   ;;  %v203_v0 = vld [vmem:[%s176_s29 + $0x10] sm:$0xff]  ;;  %v204_v1 = vld [vmem:[%s176_s29 + $0x18] sm:$0xff]  ;;  %s429_s17 = sshll.u32 %s781_s25, 3  ;;  %s440_s24 = sshll.u32 %s652_s12, 3 }
  0x26   : > { %v200_v2 = vld [vmem:[#allocation2] sm:$0x3]  ;;  %264 = vmatpush.msra.mxu2 %v203_v0  ;;  %284 = vmatpush.msra.mxu3 %v204_v1  ;;  %v202_v3 = vld [vmem:[%s176_s29 + $0x8] sm:$0xff]  ;;  %v201_v4 = vld [vmem:[%s176_s29] sm:$0xff]  ;;  %s318_s4 = scalar_lea.hbm %s830_s2, %s440_s24  ;;  %vm296_vm1 = vcmask 1041408   ;;  %vm298_vm2 = vcmask 1045508  }
  0x27   : > { %432 = vmatmul.msk.f32.vlgmr.msra.gmra.mxu2 %vm205_vm0, %v200_v2  ;;  %433 = vmatmul.msk.f32.vlgmr.msra.gmra.mxu3 %vm205_vm0, %v200_v2  ;;  %s197_s5 = scalar_lea.vmem [#allocation7], %s429_s17  ;;  %s322_s8 = sshll.u32 %s318_s4, 4  ;;  %vm300_vm3 = vcmask 1043456   ;;  %s323_s8 = int_to_ptr.hbm [resolvable:$true] %s322_s8 }
  0x28   : > { %244 = vmatpush.msra.mxu1 %v202_v3  ;;  %224 = vmatpush.msra.mxu0 %v201_v4  ;;  %s320_s7 = sshll.u32 %s197_s5, 4  ;;  %s305_s12 = scalar_lea.sflag [#allocation4], %s781_s25  ;;  %s321_s7 = int_to_ptr.vmem [resolvable:$true] %s320_s7 }
  0x29   : > { %431 = vmatmul.msk.f32.vlgmr.msra.gmra.mxu1 %vm205_vm0, %v200_v2  ;;  %430 = vmatmul.msk.f32.vlgmr.msra.gmra.mxu0 %vm205_vm0, %v200_v2  ;;  %s588_s15 = sshra.s32 %s323_s8, 4  ;;  %s594_s18 = scalar_lea.hbm %s830_s2, 16  ;;  %s589_s15 = int_to_ptr.hbm [resolvable:$true] %s588_s15 }
  0x2a   : > { %s590_s16 = scalar_lea.hbm %s589_s15, 8  ;;  %p595_p11 = scmp.lt.s32.totalorder %s589_s15, %s830_s2 }
  0x2b   : > { %p591_p1 = scmp.ne.s32.totalorder %s589_s15, %s590_s16  ;;  %p596_p12 = scmp.lt.s32.totalorder %s594_s18, %s590_s16 }
  0x2d   : > { %p592_p4 = pnand %p591_p1, %p757_p5  ;;  %p597_p13 = por %p596_p12, %p595_p11 }
  0x2f   : > { %p593_p8 = pneg %p592_p4 }
  0x31   : > { %p598_p0 = pnand %p597_p13, %p593_p8 }
  0xa6   : > { %v246_v5 = vpop.f32.mrf.mxu1  ;;  %v226_v7 = vpop.f32.mrf.mxu0 }
  0xa7   : > { %v293_v6 = vrot.slane %v246_v5, 6 }
  0xa9   : > { %v297_v12 = vsel %vm296_vm1, %v226_v7, %v293_v6 }
  0xaa   : > { %v266_v8 = vpop.f32.mrf.mxu2  ;;  %v286_v9 = vpop.f32.mrf.mxu3 }
  0xab   : > { %v294_v10 = vrot.slane %v266_v8, 4  ;;  %v295_v11 = vrot.slane %v286_v9, 2 }
  0xad   : > { %v299_v13 = vsel %vm298_vm2, %v294_v10, %v295_v11 }
  0xae   : > { %v301_v14 = vsel %vm300_vm3, %v297_v12, %v299_v13 }
  0xaf   : > { %303 = vst [vmem:[%s197_s5] sm:$0xff] %v301_v14 }
  0xb0   : > { %601 = shalt.err (!%p598_p0)
}
  0xb1   : > { %447 = dma.vmem_to_hbm [thread:$0]  (%p757_p5), %s321_s7, 128, %s323_s8, %s305_s12  }
  0xb2 PF: > { %s334_s25 = sand.u32 1, %s640_s9   ;;  %p458_p3 = pnand %p422_p9, %p727_p6 }
  0xb3   : > { %s335_s28 = scalar_lea.sflag [#allocation4], %s334_s25 }
  0xb4   : > { %p459_p7 = pneg %p458_p3 }
  0xb6   : > { %635 = dma.done.wait (%p459_p7), %s335_s28, 128  }
  0xb7   : > { %637 = vsyncadd (%p459_p7), %s335_s28, 4294967168  ;;  %s19_s14 = sadd.s32 1, %s660_s14   ;;  %s838_s9 = smov %s644_s10 }
  0xb8   : > { %p16_p10 = scmp.ge.s32.totalorder %s19_s14, 4   ;;  %s839_s10 = smov %s648_s11 }
  0xb9   : > { %s840_s11 = smov %s766_s6  ;;  %s841_s12 = smov %s656_s13 }
  0xba   : > { %s842_s13 = smov %s844_s27  ;;  %18 = sbr.rel (!%p16_p10) target bundleno = 7 (0x7), region = 79 }
  0xbf   :  { %341 = vsyncpa [#allocation3], 1 }
  0xc0   :  { %343 = vsyncpa [#allocation3 + $0x1], 1 }
  0xc1   :  { %344 = vsyncpa [#allocation6], 1 }
  0xc2   :  { %346 = vsyncpa [#allocation6 + $0x1], 1 }
  0xc3   :  { %347 = vsyncpa [#allocation4], 1 }
  0xc4   :  { %349 = vsyncpa [#allocation4 + $0x1], 1 }

</bundles_post_ra>
